<compile_context>
chip_gen: v6e
topology: v6e:2x2x1
jax: 0.10.0
libtpu: 0.0.40
codegen_flags: <defaults>
</compile_context>

<pallas_src>
import functools
import math

import jax
import jax.numpy as jnp
from jax.experimental import pallas as pl
from jax.experimental.pallas import tpu as pltpu

_CLAMP_MIN = 1e-7
_LOG_CLAMP_MIN = math.log(_CLAMP_MIN)


def _round_up(n, m):
    return (n + m - 1) // m * m


def _exp_taylor_coeffs(abs_bound, tol=1e-8, max_degree=8):
    """Taylor coefficients of exp() accurate to `tol` on [-abs_bound, abs_bound],
    or None if a short polynomial cannot reach the tolerance (-> use jnp.exp)."""
    for d in range(2, max_degree + 1):
        rem = abs_bound ** (d + 1) / math.factorial(d + 1) * math.exp(abs_bound)
        if rem < tol:
            return tuple(1.0 / math.factorial(i) for i in range(d + 1))
    return None


def _gce_rs_kernel(x_ref, y_ref, out_ref, *, B, C, k, q, p, tau, lamb,
                   clamp_free, pnorm_exp_coeffs):
    TM, kC = x_ref.shape                      # packed tile: TM rows x (k*C) lanes
    x = x_ref[...].astype(jnp.float32)        # k samples of C classes per row
    y = y_ref[...].astype(jnp.int32)          # (TM, k) packed labels

    # --- segmented reduce / broadcast over each sample's C-lane group --------
    if k > 1:
        # Constant block-one-hot "segment matrix": seg[c, g] = (c is in group g).
        # Reductions/broadcasts across a sample's C lanes run on the otherwise
        # idle MXU (f32 in, f32 accumulate), keeping VPU/EUP for element math.
        lane = jax.lax.broadcasted_iota(jnp.int32, (kC, k), 0)
        grp = jax.lax.broadcasted_iota(jnp.int32, (kC, k), 1)
        seg = ((lane >= grp * C) & (lane < grp * C + C)).astype(jnp.float32)
        lane_t = jax.lax.broadcasted_iota(jnp.int32, (k, kC), 1)
        grp_t = jax.lax.broadcasted_iota(jnp.int32, (k, kC), 0)
        seg_t = ((lane_t >= grp_t * C) & (lane_t < grp_t * C + C)).astype(jnp.float32)

        def seg_sum(v):                       # (TM, k*C) -> (TM, k)
            return jnp.dot(v, seg, preferred_element_type=jnp.float32)

        def seg_bcast(v):                     # (TM, k) -> (TM, k*C)
            return jnp.dot(v, seg_t, preferred_element_type=jnp.float32)
    else:
        def seg_sum(v):                       # single sample per row
            return jnp.sum(v, axis=-1, keepdims=True)

        def seg_bcast(v):                     # (TM, 1) broadcasts against (TM, C)
            return v

    # --- F.normalize(out, dim=1) then /tau (rsqrt instead of sqrt + divide) --
    sumsq = seg_sum(x * x)                                    # (TM, k)
    # 1/(max(||x||, 1e-12) * tau) == min(rsqrt(sumsq), 1e12) / tau
    inv = jnp.minimum(jax.lax.rsqrt(sumsq), 1e12) * (1.0 / tau)
    z = x * seg_bcast(inv)                                    # |z| <= 1/tau

    # --- softmax over each sample's C lanes WITHOUT max-subtraction ----------
    # Safe only because the logits were just L2-normalized and divided by tau,
    # so |z| <= 1/tau << 88 (asserted in the wrapper); exp() cannot overflow.
    e = jnp.exp(z)
    expsum = seg_sum(e)                                       # (TM, k)
    ln_es = jnp.log(expsum)

    # --- label one-hot gather (lane g*C + y within the packed row) -----------
    # TODO(synk): out-of-range labels are clipped into [0, C) instead of
    # raising like F.one_hot.
    g_idx = jax.lax.broadcasted_iota(jnp.int32, (TM, k), 1)
    tgt = (g_idx * C + jnp.clip(y, 0, C - 1)).astype(jnp.float32)
    lane_f = jax.lax.broadcasted_iota(jnp.int32, (TM, kC), 1).astype(jnp.float32)
    onehot = jnp.abs(lane_f - seg_bcast(tgt)) < 0.5            # (TM, k*C)

    if clamp_free:
        # clamp(probs, 1e-7, 1) provably never binds (checked in the wrapper:
        # every prob >= exp(-2/tau)/C > 1e-7), so the pows factor:
        #   probs_y**q = exp(q*(z_y - ln_es)),  probs_c**p = exp(p*z_c)*expsum**-p
        z_y = seg_sum(jnp.where(onehot, z, 0.0))               # (TM, k)
        pt_q = jnp.exp(q * (z_y - ln_es))                      # probs_y ** q
        t = p * z                                              # |t| <= p/tau (tiny)
        if pnorm_exp_coeffs is not None:
            # EUP offload: exp(t) via a short VPU Taylor polynomial (Horner).
            acc = jnp.full_like(t, pnorm_exp_coeffs[-1])
            for c0 in reversed(pnorm_exp_coeffs[:-1]):
                acc = acc * t + c0
            exp_pz = acc
        else:
            exp_pz = jnp.exp(t)
        pnorm = seg_sum(exp_pz) * jnp.exp(-p * ln_es)          # sum_c probs**p
    else:
        # General path (clamp can bind, e.g. tiny tau or huge C): materialize
        # clamped log-probs;  probs**a == exp(a * clip(logp, log 1e-7, 0)).
        logp = jnp.clip(z - seg_bcast(ln_es), _LOG_CLAMP_MIN, 0.0)
        logpt = seg_sum(jnp.where(onehot, logp, 0.0))
        pt_q = jnp.exp(q * logpt)
        pnorm = seg_sum(jnp.exp(p * logp))

    gce = (1.0 - pt_q) * (1.0 / q)                             # (TM, k)
    loss = gce + lamb * pnorm                                  # per-sample loss

    # --- mask zero-padded samples / ragged-block OOB rows, reduce to 1 scalar
    r_idx = jax.lax.broadcasted_iota(jnp.int32, (TM, k), 0)
    flat = (pl.program_id(0) * TM + r_idx) * k + g_idx         # global sample id
    masked = jnp.where(flat < B, loss, 0.0)
    rowsum = jnp.sum(masked, axis=1, keepdims=True)            # (TM, 1)
    out_ref[...] = jnp.sum(rowsum, axis=0, keepdims=True)      # (1, 1) partial sum


def _pick_tile_rows(Bp, kC, k, *, max_tile=1024, vmem_budget=12 * 1024 * 1024):
    """Largest legal packed-row tile that keeps the double-buffered input tiles
    plus ~10 lane-padded f32 temporaries inside a conservative VMEM budget
    (safe vs. the 16/32/32 MiB default scoped VMEM on v5e/v6e/v7x)."""
    bytes_per_row = (2 * kC + 2 * k + 10 * _round_up(kC, 128)) * 4
    tm = min(max_tile, _round_up(Bp, 8))
    while tm > 8 and tm * bytes_per_row > vmem_budget:
        tm = max(8, (tm // 2) // 8 * 8)
    if Bp >= 16:
        # Keep >= 2 grid blocks so the "parallel" axis can shard across the two
        # TensorCores of a v7x megacore (measured no-op on v5e/v6e).
        tm = min(tm, max(8, _round_up((Bp + 1) // 2, 8)))
    return min(tm, Bp)


def gce_and_rs(out, y, *, q=0.7, tau=10.0, p=0.1, lamb=1.2, tile_rows=None):
    """Pallas forward of GCEandRS.  out: (B, C) logits, y: (B,) int labels."""
    B, C = out.shape
    tau = float(tau)
    # The kernel drops the softmax max-subtraction; it relies on |z| <= 1/tau
    # after the L2 normalize, so exp() must stay far from f32 overflow.
    assert tau >= 0.02, "gce_and_rs kernel requires moderate 1/tau (no max-sub)"

    k = max(1, 128 // C)                      # samples packed per 128-lane row
    kC = k * C
    B_pad = _round_up(B, k)
    Bp = B_pad // k

    x = out
    yi = y.astype(jnp.int32)
    if B_pad != B:
        x = jnp.pad(x, ((0, B_pad - B), (0, 0)))    # zero rows; masked in-kernel
        yi = jnp.pad(yi, (0, B_pad - B))
    # Row-major reshapes are metadata-only: pack k samples per lane row.
    x = x.reshape(Bp, kC)
    yi = yi.reshape(Bp, k)

    if tile_rows is None:
        tile_rows = _pick_tile_rows(Bp, kC, k)
    else:
        tile_rows = max(8, _round_up(tile_rows, 8))
    if tile_rows >= Bp:
        tile_rows = Bp                        # full-extent block is always legal
    num_blocks = -(-Bp // tile_rows)          # cdiv grid; ragged tail is masked

    # clamp(probs, 1e-7, 1) cannot bind when every prob >= exp(-2/tau)/C > 1e-7.
    clamp_free = math.exp(-2.0 / tau) / C >= _CLAMP_MIN
    pnorm_exp_coeffs = _exp_taylor_coeffs(abs(float(p)) / tau) if clamp_free else None

    kernel = functools.partial(
        _gce_rs_kernel, B=B, C=C, k=k, q=float(q), p=float(p), tau=tau,
        lamb=float(lamb), clamp_free=clamp_free,
        pnorm_exp_coeffs=pnorm_exp_coeffs)

    partial_sums = pl.pallas_call(
        kernel,
        out_shape=jax.ShapeDtypeStruct((num_blocks, 1), jnp.float32),
        grid_spec=pltpu.PrefetchScalarGridSpec(
            num_scalar_prefetch=0,
            grid=(num_blocks,),
            in_specs=[
                pl.BlockSpec((tile_rows, kC), lambda i: (i, 0)),  # packed logits
                pl.BlockSpec((tile_rows, k), lambda i: (i, 0)),   # packed labels
            ],
            out_specs=pl.BlockSpec((1, 1), lambda i: (i, 0)),     # block partial sum
        ),
        compiler_params=pltpu.CompilerParams(
            dimension_semantics=("parallel",)),   # independent blocks -> megacore
    )(x, yi)

    # mean_i(gce) + lamb*mean_i(pnorm) == (sum_i of masked per-sample losses)/B
    return jnp.sum(partial_sums) / B


def gce_and_rs_ref(out, y, *, q=0.7, tau=10.0, p=0.1, lamb=1.2):
    """Pure-JAX reference mirroring the PyTorch module op-for-op."""
    B, C = out.shape
    l2 = jnp.sqrt(jnp.sum(out * out, axis=1, keepdims=True))
    xn = out / jnp.maximum(l2, 1e-12)             # F.normalize(out, dim=1)
    z = xn / tau
    probs = jnp.clip(jax.nn.softmax(z, axis=1), 1e-7, 1.0)
    onehot = jax.nn.one_hot(y, C, dtype=probs.dtype)
    gce = (1.0 - jnp.power(jnp.sum(onehot * probs, axis=1), q)) / q
    pnorm = jnp.sum(probs ** p, axis=1)
    return jnp.mean(gce) + lamb * jnp.mean(pnorm)


if __name__ == "__main__":
    key = jax.random.PRNGKey(0)
    ks = jax.random.split(key, 8)

    # 1) Module-default shapes: (batch=64, num_classes=10); single packed block.
    B, C = 64, 10
    x = jax.random.normal(ks[0], (B, C), dtype=jnp.float32)
    y = jax.random.randint(ks[1], (B,), 0, C, dtype=jnp.int32)
    got = jax.block_until_ready(gce_and_rs(x, y))
    want = gce_and_rs_ref(x, y)
    assert jnp.allclose(got, want, atol=1e-5, rtol=1e-5), (got, want)

    # 2) Batch not divisible by the packing factor or the row tile: exercises
    #    zero-padding, multi-block "parallel" grid and ragged last-block masking.
    B2, C2 = 200, 10
    x2 = jax.random.normal(ks[2], (B2, C2), dtype=jnp.float32)
    y2 = jax.random.randint(ks[3], (B2,), 0, C2, dtype=jnp.int32)
    got2 = jax.block_until_ready(gce_and_rs(x2, y2, tile_rows=8))
    want2 = gce_and_rs_ref(x2, y2)
    assert jnp.allclose(got2, want2, atol=1e-5, rtol=1e-5), (got2, want2)

    # 3) Small tau so the 1e-7 prob clamp actually binds: general clamped path.
    B3, C3, tau3 = 40, 16, 0.1
    x3 = jax.random.normal(ks[4], (B3, C3), dtype=jnp.float32)
    y3 = jax.random.randint(ks[5], (B3,), 0, C3, dtype=jnp.int32)
    got3 = jax.block_until_ready(gce_and_rs(x3, y3, tau=tau3))
    want3 = gce_and_rs_ref(x3, y3, tau=tau3)
    assert jnp.allclose(got3, want3, atol=1e-5, rtol=1e-5), (got3, want3)

    # 4) Wide class dim (k == 1 path: plain lane reductions instead of matmuls).
    B4, C4 = 24, 200
    x4 = jax.random.normal(ks[6], (B4, C4), dtype=jnp.float32)
    y4 = jax.random.randint(ks[7], (B4,), 0, C4, dtype=jnp.int32)
    got4 = jax.block_until_ready(gce_and_rs(x4, y4))
    want4 = gce_and_rs_ref(x4, y4)
    assert jnp.allclose(got4, want4, atol=1e-5, rtol=1e-5), (got4, want4)

    print("KERNEL_OK")
</pallas_src>

<mosaic_0001>
module attributes {stable_mosaic.version = 11 : i64} {
  func.func @_gce_rs_kernel(%arg0: i32, %arg1: memref<6x120xf32, #tpu.memory_space<vmem>>, %arg2: memref<6x12xi32, #tpu.memory_space<vmem>>, %arg3: memref<1x1xf32, #tpu.memory_space<vmem>>) attributes {dimension_semantics = [#tpu.dimension_semantics<parallel>], iteration_bounds = array<i64: 1>, scalar_prefetch = 0 : i64, scratch_operands = 0 : i64, tpu.core_type = #tpu.core_type<tc>, window_params = [{transform_indices = @transform_0, window_bounds = array<i64: 6, 120>}, {transform_indices = @transform_1, window_bounds = array<i64: 6, 12>}, {transform_indices = @transform_2, window_bounds = array<i64: 1, 1>}]} {
    %c0 = arith.constant 0 : index
    %c0_0 = arith.constant 0 : index
    %0 = vector.load %arg1[%c0, %c0_0] : memref<6x120xf32, #tpu.memory_space<vmem>>, vector<6x120xf32>
    %c0_1 = arith.constant 0 : index
    %c0_2 = arith.constant 0 : index
    %1 = vector.load %arg2[%c0_1, %c0_2] : memref<6x12xi32, #tpu.memory_space<vmem>>, vector<6x12xi32>
    %2 = tpu.iota {dimensions = array<i32: 0>} : vector<120x12xi32>
    %3 = tpu.iota {dimensions = array<i32: 1>} : vector<120x12xi32>
    %c10_i32 = arith.constant 10 : i32
    %4 = vector.broadcast %c10_i32 : i32 to vector<120x12xi32>
    %5 = arith.muli %3, %4 : vector<120x12xi32>
    %6 = arith.cmpi sge, %2, %5 : vector<120x12xi32>
    %c10_i32_3 = arith.constant 10 : i32
    %7 = vector.broadcast %c10_i32_3 : i32 to vector<120x12xi32>
    %8 = arith.muli %3, %7 : vector<120x12xi32>
    %c10_i32_4 = arith.constant 10 : i32
    %9 = vector.broadcast %c10_i32_4 : i32 to vector<120x12xi32>
    %10 = arith.addi %8, %9 : vector<120x12xi32>
    %11 = arith.cmpi slt, %2, %10 : vector<120x12xi32>
    %12 = arith.andi %6, %11 : vector<120x12xi1>
    %13 = arith.extui %12 : vector<120x12xi1> to vector<120x12xi32>
    %14 = arith.sitofp %13 : vector<120x12xi32> to vector<120x12xf32>
    %15 = tpu.iota {dimensions = array<i32: 1>} : vector<12x120xi32>
    %16 = tpu.iota {dimensions = array<i32: 0>} : vector<12x120xi32>
    %c10_i32_5 = arith.constant 10 : i32
    %17 = vector.broadcast %c10_i32_5 : i32 to vector<12x120xi32>
    %18 = arith.muli %16, %17 : vector<12x120xi32>
    %19 = arith.cmpi sge, %15, %18 : vector<12x120xi32>
    %c10_i32_6 = arith.constant 10 : i32
    %20 = vector.broadcast %c10_i32_6 : i32 to vector<12x120xi32>
    %21 = arith.muli %16, %20 : vector<12x120xi32>
    %c10_i32_7 = arith.constant 10 : i32
    %22 = vector.broadcast %c10_i32_7 : i32 to vector<12x120xi32>
    %23 = arith.addi %21, %22 : vector<12x120xi32>
    %24 = arith.cmpi slt, %15, %23 : vector<12x120xi32>
    %25 = arith.andi %19, %24 : vector<12x120xi1>
    %26 = arith.extui %25 : vector<12x120xi1> to vector<12x120xi32>
    %27 = arith.sitofp %26 : vector<12x120xi32> to vector<12x120xf32>
    %28 = arith.mulf %0, %0 : vector<6x120xf32>
    %cst = arith.constant dense<0.000000e+00> : vector<6x12xf32>
    %29 = tpu.matmul %28, %14, %cst {dimension_numbers = #tpu.dot_dimension_numbers<[1], [0], [0], [1], [0, 0, 1, 1], [], []>} : vector<6x120xf32>, vector<120x12xf32>, vector<6x12xf32> -> vector<6x12xf32>
    %30 = math.rsqrt %29 : vector<6x12xf32>
    %cst_8 = arith.constant 9.99999995E+11 : f32
    %31 = vector.broadcast %cst_8 : f32 to vector<6x12xf32>
    %32 = arith.minimumf %30, %31 : vector<6x12xf32>
    %cst_9 = arith.constant 1.000000e-01 : f32
    %33 = vector.broadcast %cst_9 : f32 to vector<6x12xf32>
    %34 = arith.mulf %32, %33 : vector<6x12xf32>
    %cst_10 = arith.constant dense<0.000000e+00> : vector<6x120xf32>
    %35 = tpu.matmul %34, %27, %cst_10 {dimension_numbers = #tpu.dot_dimension_numbers<[1], [0], [0], [1], [0, 0, 1, 1], [], []>} : vector<6x12xf32>, vector<12x120xf32>, vector<6x120xf32> -> vector<6x120xf32>
    %36 = arith.mulf %0, %35 : vector<6x120xf32>
    %37 = math.exp %36 : vector<6x120xf32>
    %cst_11 = arith.constant dense<0.000000e+00> : vector<6x12xf32>
    %38 = tpu.matmul %37, %14, %cst_11 {dimension_numbers = #tpu.dot_dimension_numbers<[1], [0], [0], [1], [0, 0, 1, 1], [], []>} : vector<6x120xf32>, vector<120x12xf32>, vector<6x12xf32> -> vector<6x12xf32>
    %39 = math.log %38 : vector<6x12xf32>
    %40 = tpu.iota {dimensions = array<i32: 1>} : vector<6x12xi32>
    %c10_i32_12 = arith.constant 10 : i32
    %41 = vector.broadcast %c10_i32_12 : i32 to vector<6x12xi32>
    %42 = arith.muli %40, %41 : vector<6x12xi32>
    %c0_i32 = arith.constant 0 : i32
    %c9_i32 = arith.constant 9 : i32
    %43 = vector.broadcast %c0_i32 : i32 to vector<6x12xi32>
    %44 = arith.maxsi %43, %1 : vector<6x12xi32>
    %45 = vector.broadcast %c9_i32 : i32 to vector<6x12xi32>
    %46 = arith.minsi %45, %44 : vector<6x12xi32>
    %47 = arith.addi %42, %46 : vector<6x12xi32>
    %48 = arith.sitofp %47 : vector<6x12xi32> to vector<6x12xf32>
    %49 = tpu.iota {dimensions = array<i32: 1>} : vector<6x120xi32>
    %50 = arith.sitofp %49 : vector<6x120xi32> to vector<6x120xf32>
    %cst_13 = arith.constant dense<0.000000e+00> : vector<6x120xf32>
    %51 = tpu.matmul %48, %27, %cst_13 {dimension_numbers = #tpu.dot_dimension_numbers<[1], [0], [0], [1], [0, 0, 1, 1], [], []>} : vector<6x12xf32>, vector<12x120xf32>, vector<6x120xf32> -> vector<6x120xf32>
    %52 = arith.subf %50, %51 : vector<6x120xf32>
    %53 = math.absf %52 : vector<6x120xf32>
    %cst_14 = arith.constant 5.000000e-01 : f32
    %54 = vector.broadcast %cst_14 : f32 to vector<6x120xf32>
    %55 = arith.cmpf olt, %53, %54 : vector<6x120xf32>
    %cst_15 = arith.constant 0.000000e+00 : f32
    %56 = vector.broadcast %cst_15 : f32 to vector<6x120xf32>
    %57 = arith.select %55, %36, %56 : vector<6x120xi1>, vector<6x120xf32>
    %cst_16 = arith.constant dense<0.000000e+00> : vector<6x12xf32>
    %58 = tpu.matmul %57, %14, %cst_16 {dimension_numbers = #tpu.dot_dimension_numbers<[1], [0], [0], [1], [0, 0, 1, 1], [], []>} : vector<6x120xf32>, vector<120x12xf32>, vector<6x12xf32> -> vector<6x12xf32>
    %59 = arith.subf %58, %39 : vector<6x12xf32>
    %cst_17 = arith.constant 0.699999988 : f32
    %60 = vector.broadcast %cst_17 : f32 to vector<6x12xf32>
    %61 = arith.mulf %60, %59 : vector<6x12xf32>
    %62 = math.exp %61 : vector<6x12xf32>
    %cst_18 = arith.constant 1.000000e-01 : f32
    %63 = vector.broadcast %cst_18 : f32 to vector<6x120xf32>
    %64 = arith.mulf %63, %36 : vector<6x120xf32>
    %cst_19 = arith.constant 0.166666672 : f32
    %65 = vector.broadcast %cst_19 : f32 to vector<6x120xf32>
    %66 = arith.mulf %65, %64 : vector<6x120xf32>
    %cst_20 = arith.constant 5.000000e-01 : f32
    %67 = vector.broadcast %cst_20 : f32 to vector<6x120xf32>
    %68 = arith.addf %66, %67 : vector<6x120xf32>
    %69 = arith.mulf %68, %64 : vector<6x120xf32>
    %cst_21 = arith.constant 1.000000e+00 : f32
    %70 = vector.broadcast %cst_21 : f32 to vector<6x120xf32>
    %71 = arith.addf %69, %70 : vector<6x120xf32>
    %72 = arith.mulf %71, %64 : vector<6x120xf32>
    %cst_22 = arith.constant 1.000000e+00 : f32
    %73 = vector.broadcast %cst_22 : f32 to vector<6x120xf32>
    %74 = arith.addf %72, %73 : vector<6x120xf32>
    %cst_23 = arith.constant dense<0.000000e+00> : vector<6x12xf32>
    %75 = tpu.matmul %74, %14, %cst_23 {dimension_numbers = #tpu.dot_dimension_numbers<[1], [0], [0], [1], [0, 0, 1, 1], [], []>} : vector<6x120xf32>, vector<120x12xf32>, vector<6x12xf32> -> vector<6x12xf32>
    %cst_24 = arith.constant -1.000000e-01 : f32
    %76 = vector.broadcast %cst_24 : f32 to vector<6x12xf32>
    %77 = arith.mulf %76, %39 : vector<6x12xf32>
    %78 = math.exp %77 : vector<6x12xf32>
    %79 = arith.mulf %75, %78 : vector<6x12xf32>
    %cst_25 = arith.constant 1.000000e+00 : f32
    %80 = vector.broadcast %cst_25 : f32 to vector<6x12xf32>
    %81 = arith.subf %80, %62 : vector<6x12xf32>
    %cst_26 = arith.constant 1.42857146 : f32
    %82 = vector.broadcast %cst_26 : f32 to vector<6x12xf32>
    %83 = arith.mulf %81, %82 : vector<6x12xf32>
    %cst_27 = arith.constant 1.200000e+00 : f32
    %84 = vector.broadcast %cst_27 : f32 to vector<6x12xf32>
    %85 = arith.mulf %84, %79 : vector<6x12xf32>
    %86 = arith.addf %83, %85 : vector<6x12xf32>
    %87 = tpu.iota {dimensions = array<i32: 0>} : vector<6x12xi32>
    %c6_i32 = arith.constant 6 : i32
    %88 = arith.muli %arg0, %c6_i32 : i32
    %89 = vector.broadcast %88 : i32 to vector<6x12xi32>
    %90 = arith.addi %89, %87 : vector<6x12xi32>
    %c12_i32 = arith.constant 12 : i32
    %91 = vector.broadcast %c12_i32 : i32 to vector<6x12xi32>
    %92 = arith.muli %90, %91 : vector<6x12xi32>
    %93 = arith.addi %92, %40 : vector<6x12xi32>
    %c64_i32 = arith.constant 64 : i32
    %94 = vector.broadcast %c64_i32 : i32 to vector<6x12xi32>
    %95 = arith.cmpi slt, %93, %94 : vector<6x12xi32>
    %cst_28 = arith.constant 0.000000e+00 : f32
    %96 = vector.broadcast %cst_28 : f32 to vector<6x12xf32>
    %97 = arith.select %95, %86, %96 : vector<6x12xi1>, vector<6x12xf32>
    %cst_29 = arith.constant dense<0.000000e+00> : vector<6xf32>
    %98 = vector.multi_reduction <add>, %97, %cst_29 [1] : vector<6x12xf32> to vector<6xf32>
    %99 = vector.shape_cast %98 : vector<6xf32> to vector<6x1xf32>
    %cst_30 = arith.constant dense<0.000000e+00> : vector<1xf32>
    %100 = vector.multi_reduction <add>, %99, %cst_30 [0] : vector<6x1xf32> to vector<1xf32>
    %101 = vector.shape_cast %100 : vector<1xf32> to vector<1x1xf32>
    %c0_31 = arith.constant 0 : index
    %c0_32 = arith.constant 0 : index
    %102 = vector.load %arg3[%c0_31, %c0_32] : memref<1x1xf32, #tpu.memory_space<vmem>>, vector<1x1xf32>
    tpu.vector_store %arg3[%c0_31, %c0_32], %101 {strides = array<i32>} : memref<1x1xf32, #tpu.memory_space<vmem>>, vector<1x1xf32>,
    return
  }
  func.func @transform_0(%arg0: i32) -> (i32, i32) {
    %c0_i32 = arith.constant 0 : i32
    %c0_i32_0 = arith.constant 0 : i32
    return %arg0, %c0_i32 : i32, i32
  }
  func.func @transform_1(%arg0: i32) -> (i32, i32) {
    %c0_i32 = arith.constant 0 : i32
    %c0_i32_0 = arith.constant 0 : i32
    return %arg0, %c0_i32 : i32, i32
  }
  func.func @transform_2(%arg0: i32) -> (i32, i32) {
    %c0_i32 = arith.constant 0 : i32
    %c0_i32_0 = arith.constant 0 : i32
    return %arg0, %c0_i32 : i32, i32
  }
}

</mosaic_0001>

<bundles_post_ra>
// kernel: tpu_custom_call.1
= control target key start
LH: loop header
LB: loop body
LE: loop exit
PB: predicated region body
PF: predicated region fallthrough
CT: control target
= control target key end

     0   :  { %7 = vsyncpa [#allocation3], 0  ;;  %s1477_s0 = inlined_call_operand.hbm [shape: f32[6,120], index: 0, kind: input, shape index: {}]   ;;  %s1478_s1 = inlined_call_operand.hbm [shape: s32[6,12], index: 1, kind: input, shape index: {}]   ;;  %s1479_s2 = inlined_call_operand.hbm [shape: f32[1,1], index: 2, kind: output, shape index: {}]  }
   0x1   :  { %8 = vsyncpa [#allocation6], 0 }
   0x2   :  { %9 = vsyncpa [#allocation4], 0  ;;  %s1052_s9 = smov [#allocation2]   ;;  %s1053_s11 = smov [#allocation5]  }
   0x3   :  { %s16_s10 = sshll.u32 %s1052_s9, 4  ;;  %s26_s12 = sshll.u32 %s1053_s11, 4  ;;  %s17_s10 = int_to_ptr.vmem [resolvable:$true] %s16_s10  ;;  %s27_s12 = int_to_ptr.vmem [resolvable:$true] %s26_s12 }
   0x4   :  { %s994_s13 = scalar_lea.vmem %s17_s10, 128  ;;  %p999_p1 = scmp.lt.s32.totalorder %s17_s10, %s17_s10 }
   0x5   :  { %p995_p0 = scmp.ne.s32.totalorder %s17_s10, %s994_s13  ;;  %p1000_p2 = scmp.lt.s32.totalorder %s994_s13, %s994_s13 }
   0x7   :  { %p1001_p3 = por %p1000_p2, %p999_p1 }
   0x9   :  { %p1002_p4 = pnand %p1001_p3, %p995_p0 }
   0xb   :  { %1005 = shalt.err (!%p1002_p4)
}
   0xc   :  { %19 = dma.hbm_to_vmem [thread:$0]  %s1477_s0, 128, %s17_s10, [#allocation3]  }
   0xd   :  { %s1014_s16 = scalar_lea.vmem %s27_s12, 128  ;;  %p1019_p6 = scmp.lt.s32.totalorder %s27_s12, %s27_s12 }
   0xe   :  { %p1015_p5 = scmp.ne.s32.totalorder %s27_s12, %s1014_s16  ;;  %p1020_p7 = scmp.lt.s32.totalorder %s1014_s16, %s1014_s16 }
  0x10   :  { %p1021_p8 = por %p1020_p7, %p1019_p6 }
  0x12   :  { %p1022_p9 = pnand %p1021_p8, %p1015_p5 }
  0x14   :  { %1025 = shalt.err (!%p1022_p9)
}
  0x15   :  { %29 = dma.hbm_to_vmem [thread:$0]  %s1478_s1, 128, %s27_s12, [#allocation6]  }
  0x16   :  { %1046 = dma.done.wait [#allocation3], 128  }
  0x17   :  { %1047 = vsyncadd [#allocation3], 4294967168  ;;  %v38_v0 = vlaneseq }
  0x18   :  { %1048 = dma.done.wait [#allocation6], 128  }
  0x19   :  { %1049 = vsyncadd [#allocation6], 4294967168  ;;  %v1054_v1 = vmov 0.0   ;;  %vm1480_vm0 = vmmov 0   ;;  %v1082_v2 = vshrl.u32 %v38_v0, 7  ;;  %v1084_v3 = vand.u32 127, %v38_v0 }
  0x1a   :  { %824 = vmatprep.subr.mxu0 %v1054_v1  ;;  %854 = vmatprep.mubr.msk.f32.mxu0 %vm1480_vm0, %v1054_v1  ;;  %v1056_v12 = vmov 1.0   ;;  %v1517_v25 = vmov 0  ;;  %v1519_v27 = vmov 0  ;;  %v1521_v29 = vmov 0  ;;  %v1240_v34 = vld [vmem:[#allocation2] sm:$0x3f] }
  0x1b   :  { %857 = vmatprep.subr.mxu1 %v1054_v1  ;;  %861 = vmatprep.mubr.msk.f32.mxu1 %vm1480_vm0, %v1054_v1  ;;  %v53_v4 = vadd.s32 112, %v1082_v2  ;;  %v1091_v5 = vmul.u32 10, %v1084_v3  ;;  %v52_v6 = vadd.s32 104, %v1082_v2  ;;  %v51_v7 = vadd.s32 96, %v1082_v2  ;;  %v37_v39 = vld [vmem:[#allocation5] sm:$0x3f] }
  0x1c   :  { %v50_v9 = vadd.s32 88, %v1082_v2  ;;  %v49_v10 = vadd.s32 80, %v1082_v2  ;;  %v48_v14 = vadd.s32 72, %v1082_v2  ;;  %v47_v16 = vadd.s32 64, %v1082_v2  ;;  %s1057_s0 = smov [#allocation7]  }
  0x1d   :  { %vm71_vm1 = vcmp.ge.s32.totalorder %v53_v4, %v1091_v5  ;;  %v1097_v8 = vadd.s32 10, %v1091_v5  ;;  %vm70_vm2 = vcmp.ge.s32.totalorder %v52_v6, %v1091_v5  ;;  %vm69_vm5 = vcmp.ge.s32.totalorder %v51_v7, %v1091_v5  ;;  %s657_s1 = sshll.u32 %s1057_s0, 4  ;;  %s658_s1 = int_to_ptr.vmem [resolvable:$true] %s657_s1 }
  0x1e   :  { %vm68_vm9 = vcmp.ge.s32.totalorder %v50_v9, %v1091_v5  ;;  %vm67_vm12 = vcmp.ge.s32.totalorder %v49_v10, %v1091_v5  ;;  %vm66_vm15 = vcmp.ge.s32.totalorder %v48_v14, %v1091_v5  ;;  %v46_v18 = vadd.s32 56, %v1082_v2  ;;  %s1026_s19 = scalar_lea.vmem %s658_s1, 16  ;;  %s1030_s20 = scalar_lea.vmem %s658_s1, 32 }
  0x1f   :  { %vm87_vm3 = vcmp.lt.s32.totalorder %v53_v4, %v1097_v8  ;;  %vm86_vm4 = vcmp.lt.s32.totalorder %v52_v6, %v1097_v8  ;;  %vm85_vm6 = vcmp.lt.s32.totalorder %v51_v7, %v1097_v8  ;;  %vm84_vm10 = vcmp.lt.s32.totalorder %v50_v9, %v1097_v8  ;;  %p1027_p10 = scmp.ne.s32.totalorder %s658_s1, %s1026_s19  ;;  %p1031_p11 = scmp.lt.s32.totalorder %s658_s1, %s658_s1 }
  0x20   :  { %vm1106_vm7 = vmand %vm71_vm1, %vm87_vm3  ;;  %vm83_vm13 = vcmp.lt.s32.totalorder %v49_v10, %v1097_v8  ;;  %vm82_vm1 = vcmp.lt.s32.totalorder %v48_v14, %v1097_v8  ;;  %vm65_vm3 = vcmp.ge.s32.totalorder %v47_v16, %v1091_v5  ;;  %v45_v20 = vadd.s32 48, %v1082_v2  ;;  %p1032_p12 = scmp.lt.s32.totalorder %s1030_s20, %s1026_s19 }
  0x21   :  { %825 = vmatpush3.msk.msra.mxu0 %vm1106_vm7, %v1056_v12  ;;  %vm1113_vm8 = vmand %vm70_vm2, %vm86_vm4  ;;  %vm81_vm4 = vcmp.lt.s32.totalorder %v47_v16, %v1097_v8  ;;  %v44_v22 = vadd.s32 40, %v1082_v2  ;;  %v43_v24 = vadd.s32 32, %v1082_v2  ;;  %v42_v26 = vadd.s32 24, %v1082_v2 }
  0x22   :  { %826 = vmatprep.subr.mxu0 %v1054_v1  ;;  %vm1121_vm11 = vmand %vm69_vm5, %vm85_vm6  ;;  %vm64_vm6 = vcmp.ge.s32.totalorder %v46_v18, %v1091_v5  ;;  %v41_v28 = vadd.s32 16, %v1082_v2  ;;  %v40_v30 = vadd.s32 8, %v1082_v2  ;;  %v1523_v31 = vmov 0  ;;  %p1033_p13 = por %p1032_p12, %p1031_p11 }
  0x23   :  { %827 = vmatpush3.msk.msra.mxu0 %vm1113_vm8, %v1056_v12  ;;  %vm1132_vm14 = vmand %vm68_vm9, %vm84_vm10  ;;  %vm80_vm9 = vcmp.lt.s32.totalorder %v46_v18, %v1097_v8  ;;  %v1525_v32 = vmov 0  ;;  %v1527_v33 = vmov 0  ;;  %v1529_v35 = vmov 0 }
  0x24   :  { %828 = vmatprep.subr.mxu0 %v1054_v1  ;;  %vm1143_vm2 = vmand %vm67_vm12, %vm83_vm13  ;;  %vm63_vm12 = vcmp.ge.s32.totalorder %v45_v20, %v1091_v5  ;;  %vm79_vm13 = vcmp.lt.s32.totalorder %v45_v20, %v1097_v8  ;;  %v1531_v36 = vmov 0  ;;  %v147_v37 = vmul.f32 %v1240_v34, %v1240_v34  ;;  %p1034_p0 = pnand %p1033_p13, %p1027_p10 }
  0x25   :  { %829 = vmatpush3.msk.msra.mxu0 %vm1121_vm11, %v1056_v12  ;;  %vm1154_vm5 = vmand %vm66_vm15, %vm82_vm1  ;;  %vm62_vm1 = vcmp.ge.s32.totalorder %v44_v22, %v1091_v5  ;;  %v134_v38 = vmul.u32 10, %v40_v30  ;;  %v133_v41 = vmul.u32 10, %v1082_v2  ;;  %v387_v55 = vcvt.s32.f32 %v1084_v3 }
  0x26   :  { %830 = vmatprep.subr.mxu0 %v1054_v1  ;;  %vm1165_vm10 = vmand %vm65_vm3, %vm81_vm4  ;;  %vm78_vm3 = vcmp.lt.s32.totalorder %v44_v22, %v1097_v8 }
  0x27   :  { %831 = vmatpush3.msk.msra.mxu0 %vm1132_vm14, %v1056_v12  ;;  %vm1176_vm15 = vmand %vm64_vm6, %vm80_vm9  ;;  %vm61_vm6 = vcmp.ge.s32.totalorder %v43_v24, %v1091_v5  ;;  %vm77_vm9 = vcmp.lt.s32.totalorder %v43_v24, %v1097_v8  ;;  %v138_v40 = vadd.s32 10, %v134_v38  ;;  %v137_v43 = vadd.s32 10, %v133_v41 }
  0x28   :  { %832 = vmatprep.subr.mxu0 %v1054_v1  ;;  %v1518_v25 = vsel %vm1176_vm15, 4294967295, %v1517_v25  ;;  %vm1187_vm4 = vmand %vm63_vm12, %vm79_vm13  ;;  %vm60_vm12 = vcmp.ge.s32.totalorder %v42_v26, %v1091_v5  ;;  %vm76_vm13 = vcmp.lt.s32.totalorder %v42_v26, %v1097_v8 }
  0x29   :  { %833 = vmatpush3.msk.msra.mxu0 %vm1143_vm2, %v1056_v12  ;;  %v1520_v27 = vsel %vm1187_vm4, 4294967295, %v1519_v27  ;;  %vm1198_vm0 = vmand %vm62_vm1, %vm78_vm3  ;;  %vm59_vm1 = vcmp.ge.s32.totalorder %v41_v28, %v1091_v5  ;;  %vm75_vm3 = vcmp.lt.s32.totalorder %v41_v28, %v1097_v8 }
  0x2a   :  { %834 = vmatprep.subr.mxu0 %v1054_v1  ;;  %v1522_v29 = vsel %vm1198_vm0, 4294967295, %v1521_v29 }
  0x2b   :  { %835 = vmatpush3.msk.msra.mxu0 %vm1154_vm5, %v1056_v12 }
  0x2c   :  { %836 = vmatprep.subr.mxu0 %v1054_v1 }
  0x2d   :  { %837 = vmatpush3.msk.msra.mxu0 %vm1165_vm10, %v1056_v12 }
  0x2e   :  { %838 = vmatprep.subr.mxu0 %v1054_v1 }
  0x2f   :  { %839 = vmatpush3.msk.msra.mxu0 %vm1176_vm15, %v1056_v12  ;;  %vm1209_vm15 = vmand %vm61_vm6, %vm77_vm9  ;;  %vm58_vm6 = vcmp.ge.s32.totalorder %v40_v30, %v1091_v5  ;;  %vm74_vm9 = vcmp.lt.s32.totalorder %v40_v30, %v1097_v8 }
  0x30   :  { %840 = vmatprep.subr.mxu0 %v1054_v1  ;;  %v1524_v31 = vsel %vm1209_vm15, 4294967295, %v1523_v31 }
  0x31   :  { %841 = vmatpush3.msk.msra.mxu0 %vm1187_vm4, %v1056_v12  ;;  %vm1219_vm4 = vmand %vm60_vm12, %vm76_vm13  ;;  %vm57_vm12 = vcmp.ge.s32.totalorder %v1082_v2, %v1091_v5  ;;  %vm73_vm13 = vcmp.lt.s32.totalorder %v1082_v2, %v1097_v8 }
  0x32   :  { %842 = vmatprep.subr.mxu0 %v1054_v1  ;;  %v1526_v32 = vsel %vm1219_vm4, 4294967295, %v1525_v32 }
  0x33   :  { %843 = vmatpush3.msk.msra.mxu0 %vm1198_vm0, %v1056_v12  ;;  %vm1229_vm0 = vmand %vm59_vm1, %vm75_vm3  ;;  %vm1494_vm3 = vcmask 982016  }
  0x34   :  { %844 = vmatprep.subr.mxu0 %v1054_v1  ;;  %v1528_v33 = vsel %vm1229_vm0, 4294967295, %v1527_v33  ;;  %vm1251_vm1 = vmand %vm57_vm12, %vm73_vm13  ;;  %vm136_vm12 = vcmp.ge.s32.totalorder %v1084_v3, %v134_v38  ;;  %vm140_vm13 = vcmp.lt.s32.totalorder %v1084_v3, %v138_v40 }
  0x35   :  { %845 = vmatpush3.msk.msra.mxu0 %vm1209_vm15, %v1056_v12  ;;  %vm1243_vm15 = vmand %vm58_vm6, %vm74_vm9  ;;  %v1532_v36 = vsel %vm1251_vm1, 4294967295, %v1531_v36  ;;  %vm1533_vm6 = vmmov 0   ;;  %vm381_vm9 = vcmp.gt.s32.totalorder %v37_v39, 0 }
  0x36   :  { %846 = vmatprep.subr.mxu0 %v1054_v1  ;;  %v1530_v35 = vsel %vm1243_vm15, 4294967295, %v1529_v35  ;;  %v382_v42 = vsel %vm381_vm9, %v37_v39, 0 }
  0x37   :  { %847 = vmatpush3.msk.msra.mxu0 %vm1219_vm4, %v1056_v12  ;;  %vm139_vm4 = vcmp.lt.s32.totalorder %v1084_v3, %v137_v43 }
  0x38   :  { %848 = vmatprep.subr.mxu0 %v1054_v1 }
  0x39   :  { %849 = vmatpush3.msk.msra.mxu0 %vm1229_vm0, %v1056_v12  ;;  %vm135_vm0 = vcmp.ge.s32.totalorder %v1084_v3, %v133_v41 }
  0x3a   :  { %850 = vmatprep.subr.mxu0 %v1054_v1  ;;  %vm141_vm9 = vmand %vm135_vm0, %vm139_vm4  ;;  %vm1534_vm0 = vnez %v1518_v25  ;;  %vm1535_vm4 = vnez %v1520_v27 }
  0x3b   :  { %851 = vmatpush3.msk.msra.mxu0 %vm1243_vm15, %v1056_v12  ;;  %vm383_vm15 = vcmp.lt.s32.totalorder %v382_v42, 9 }
  0x3c   :  { %852 = vmatprep.subr.mxu0 %v1054_v1  ;;  %v384_v44 = vsel %vm383_vm15, %v382_v42, 9  ;;  %vm1499_vm15 = vcmask 97280  }
  0x3d   :  { %853 = vmatpush3.msk.msra.mxu0 %vm1251_vm1, %v1056_v12  ;;  %vm142_vm1 = vmand %vm136_vm12, %vm140_vm13  ;;  %v385_v46 = vadd.s32 %v384_v44, %v1091_v5  ;;  %vm1538_vm12 = vnez %v1526_v32  ;;  %vm1539_vm13 = vnez %v1528_v33 }
  0x3e   :  { %855 = vmatmul.mubr.msk.f32.vlgmr.msra.gmra.mxu0 %vm1494_vm3, %v147_v37  ;;  %897 = vmatprep.subr.mxu0 %v1054_v1  ;;  %v683_v45 = vsel %vm142_vm1, 1.0, %v1054_v1  ;;  %vm229_vm3 = vcmask 1043456   ;;  %vm1536_vm1 = vnez %v1522_v29 }
  0x3f   :  { %901 = vmatprep.mubr.msk.f32.mxu0 %vm1533_vm6, %v1054_v1  ;;  %898 = vmatpush3.msk.msra.mxu0 %vm229_vm3, %v683_v45  ;;  %v386_v47 = vcvt.s32.f32 %v385_v46 }
  0x40   :  { %858 = vmatpush3.msk.msra.mxu1 %vm229_vm3, %v683_v45  ;;  %899 = vmatprep.subr.mxu0 %v1054_v1  ;;  %vm1537_vm3 = vnez %v1524_v31 }
  0x41   :  { %859 = vmatprep.subr.mxu1 %v1054_v1  ;;  %900 = vmatpush3.msk.msra.mxu0 %vm141_vm9, %v1056_v12 }
  0x42   :  { %860 = vmatpush3.msk.msra.mxu1 %vm141_vm9, %v1056_v12  ;;  %902 = vmatmul.mubr.msk.f32.vlgmr.msra.gmra.mxu0 %vm1499_vm15, %v386_v47  ;;  %vm1540_vm9 = vnez %v1530_v35  ;;  %vm1541_vm15 = vnez %v1532_v36 }
  0x43   :  { %904 = vmatprep.subr.mxu0 %v1054_v1  ;;  %864 = vmatprep.subr.mxu1 %v1054_v1 }
  0x44   :  { %905 = vmatpush3.msk.msra.mxu0 %vm1106_vm7, %v1056_v12  ;;  %934 = vmatprep.mubr.msk.f32.mxu0 %vm1533_vm6, %v1054_v1 }
  0x45   :  { %906 = vmatprep.subr.mxu0 %v1054_v1 }
  0x46   :  { %907 = vmatpush3.msk.msra.mxu0 %vm1113_vm8, %v1056_v12 }
  0x47   :  { %908 = vmatprep.subr.mxu0 %v1054_v1 }
  0x48   :  { %909 = vmatpush3.msk.msra.mxu0 %vm1121_vm11, %v1056_v12 }
  0x49   :  { %910 = vmatprep.subr.mxu0 %v1054_v1 }
  0x4a   :  { %911 = vmatpush3.msk.msra.mxu0 %vm1132_vm14, %v1056_v12 }
  0x4b   :  { %912 = vmatprep.subr.mxu0 %v1054_v1 }
  0x4c   :  { %913 = vmatpush3.msk.msra.mxu0 %vm1143_vm2, %v1056_v12 }
  0x4d   :  { %914 = vmatprep.subr.mxu0 %v1054_v1 }
  0x4e   :  { %915 = vmatpush3.msk.msra.mxu0 %vm1154_vm5, %v1056_v12 }
  0x4f   :  { %916 = vmatprep.subr.mxu0 %v1054_v1 }
  0x50   :  { %917 = vmatpush3.msk.msra.mxu0 %vm1165_vm10, %v1056_v12 }
  0x51   :  { %918 = vmatprep.subr.mxu0 %v1054_v1 }
  0x52   :  { %919 = vmatpush3.msk.msra.mxu0 %vm1534_vm0, %v1056_v12 }
  0x53   :  { %920 = vmatprep.subr.mxu0 %v1054_v1 }
  0x54   :  { %921 = vmatpush3.msk.msra.mxu0 %vm1535_vm4, %v1056_v12 }
  0x55   :  { %922 = vmatprep.subr.mxu0 %v1054_v1 }
  0x56   :  { %923 = vmatpush3.msk.msra.mxu0 %vm1536_vm1, %v1056_v12 }
  0x57   :  { %924 = vmatprep.subr.mxu0 %v1054_v1 }
  0x58   :  { %925 = vmatpush3.msk.msra.mxu0 %vm1537_vm3, %v1056_v12 }
  0x59   :  { %926 = vmatprep.subr.mxu0 %v1054_v1 }
  0x5a   :  { %927 = vmatpush3.msk.msra.mxu0 %vm1538_vm12, %v1056_v12  ;;  %vm1542_vm12 = vcmask 97280  }
  0x5b   :  { %928 = vmatprep.subr.mxu0 %v1054_v1 }
  0x5c   :  { %929 = vmatpush3.msk.msra.mxu0 %vm1539_vm13, %v1056_v12 }
  0x5d   :  { %930 = vmatprep.subr.mxu0 %v1054_v1 }
  0x5e   :  { %931 = vmatpush3.msk.msra.mxu0 %vm1540_vm9, %v1056_v12 }
  0x5f   :  { %932 = vmatprep.subr.mxu0 %v1054_v1 }
  0x60   :  { %933 = vmatpush3.msk.msra.mxu0 %vm1541_vm15, %v1056_v12 }
  0xfe   :  { %v218_v48 = vpop.f32.mrf.mxu0 }
  0xff   :  { %976 = vrsqrt.f32 %v218_v48 }
 0x100   :  { %v856_v49 = vpop.f32.mrf.mxu0 }
 0x102   :  { %v457_v53 = vpop.f32.mrf.mxu0 }
 0x103   :  { %v461_v56 = vsub.f32 %v387_v55, %v457_v53 }
 0x104   :  { %v903_v54 = vpop.f32.mrf.mxu0 }
 0x105   :  { %v462_v57 = vand.u32 2147483647, %v461_v56 }
 0x10c   :  { %v977_v50 = vpop.eup %976 }
 0x10d   :  { %v223_v51 = vmin.f32 %v977_v50, 1e+12 }
 0x10f   :  { %v224_v52 = vmul.f32 0.1, %v223_v51 }
 0x111   :  { %862 = vmatmul.mubr.msk.f32.vlgmr.msra.gmra.mxu1 %vm1542_vm12, %v224_v52  ;;  %vm1543_vm12 = vnez %v1526_v32 }
 0x112   :  { %865 = vmatpush3.msk.msra.mxu1 %vm1106_vm7, %v1056_v12  ;;  %894 = vmatprep.mubr.msk.f32.mxu1 %vm1533_vm6, %v1054_v1 }
 0x113   :  { %866 = vmatprep.subr.mxu1 %v1054_v1 }
 0x114   :  { %867 = vmatpush3.msk.msra.mxu1 %vm1113_vm8, %v1056_v12 }
 0x115   :  { %868 = vmatprep.subr.mxu1 %v1054_v1 }
 0x116   :  { %869 = vmatpush3.msk.msra.mxu1 %vm1121_vm11, %v1056_v12 }
 0x117   :  { %870 = vmatprep.subr.mxu1 %v1054_v1 }
 0x118   :  { %871 = vmatpush3.msk.msra.mxu1 %vm1132_vm14, %v1056_v12 }
 0x119   :  { %872 = vmatprep.subr.mxu1 %v1054_v1 }
 0x11a   :  { %873 = vmatpush3.msk.msra.mxu1 %vm1143_vm2, %v1056_v12 }
 0x11b   :  { %874 = vmatprep.subr.mxu1 %v1054_v1 }
 0x11c   :  { %875 = vmatpush3.msk.msra.mxu1 %vm1154_vm5, %v1056_v12 }
 0x11d   :  { %876 = vmatprep.subr.mxu1 %v1054_v1 }
 0x11e   :  { %877 = vmatpush3.msk.msra.mxu1 %vm1165_vm10, %v1056_v12 }
 0x11f   :  { %878 = vmatprep.subr.mxu1 %v1054_v1 }
 0x120   :  { %879 = vmatpush3.msk.msra.mxu1 %vm1534_vm0, %v1056_v12 }
 0x121   :  { %880 = vmatprep.subr.mxu1 %v1054_v1 }
 0x122   :  { %881 = vmatpush3.msk.msra.mxu1 %vm1535_vm4, %v1056_v12 }
 0x123   :  { %882 = vmatprep.subr.mxu1 %v1054_v1 }
 0x124   :  { %883 = vmatpush3.msk.msra.mxu1 %vm1536_vm1, %v1056_v12 }
 0x125   :  { %884 = vmatprep.subr.mxu1 %v1054_v1 }
 0x126   :  { %885 = vmatpush3.msk.msra.mxu1 %vm1537_vm3, %v1056_v12 }
 0x127   :  { %886 = vmatprep.subr.mxu1 %v1054_v1 }
 0x128   :  { %887 = vmatpush3.msk.msra.mxu1 %vm1543_vm12, %v1056_v12 }
 0x129   :  { %888 = vmatprep.subr.mxu1 %v1054_v1 }
 0x12a   :  { %889 = vmatpush3.msk.msra.mxu1 %vm1539_vm13, %v1056_v12  ;;  %vm463_vm13 = vcmp.lt.f32.partialorder %v462_v57, 0.5 }
 0x12b   :  { %890 = vmatprep.subr.mxu1 %v1054_v1 }
 0x12c   :  { %891 = vmatpush3.msk.msra.mxu1 %vm1540_vm9, %v1056_v12  ;;  %vm1544_vm9 = vcmask 982016  }
 0x12d   :  { %892 = vmatprep.subr.mxu1 %v1054_v1 }
 0x12e   :  { %893 = vmatpush3.msk.msra.mxu1 %vm1541_vm15, %v1056_v12  ;;  %vm1545_vm15 = vmmov %vm1544_vm9 }
 0x12f   :  { %937 = vmatprep.subr.mxu1 %v1054_v1 }
 0x1d1   :  { %v299_v58 = vpop.f32.mrf.mxu1 }
 0x1d2   :  { %v303_v59 = vmul.f32 %v299_v58, %v1240_v34 }
 0x1d3   :  { %v863_v60 = vpop.f32.mrf.mxu1 }
 0x1d4   :  { %v304_v61 = vmul.f32 1.442695, %v303_v59  ;;  %v464_v62 = vsel %vm463_vm13, %v303_v59, 0.0  ;;  %v542_v0 = vmul.f32 0.1, %v303_v59 }
 0x1d5   :  { %935 = vmatmul.mubr.msk.f32.vlgmr.msra.gmra.mxu0 %vm1544_vm9, %v464_v62 }
 0x1d6   :  { %978 = vpow2.f32 %v304_v61  ;;  %v543_v4 = vmul.f32 0.16666667, %v542_v0 }
 0x1d8   :  { %v544_v5 = vadd.f32 0.5, %v543_v4 }
 0x1da   :  { %v545_v6 = vmul.f32 %v544_v5, %v542_v0 }
 0x1dc   :  { %v546_v7 = vadd.f32 1.0, %v545_v6 }
 0x1de   :  { %v547_v8 = vmul.f32 %v546_v7, %v542_v0 }
 0x1e0   :  { %v548_v9 = vadd.f32 1.0, %v547_v8 }
 0x1e3   :  { %v979_v63 = vpop.eup %978 }
 0x1e4   :  { %895 = vmatmul.mubr.msk.f32.vlgmr.msra.gmra.mxu1 %vm1545_vm15, %v979_v63 }
 0x1e5   :  { %938 = vmatpush3.msk.msra.mxu1 %vm1106_vm7, %v1056_v12  ;;  %967 = vmatprep.mubr.msk.f32.mxu1 %vm1533_vm6, %v1054_v1  ;;  %vm1546_vm7 = vnez %v1528_v33  ;;  %vm649_vm6 = vcmask 0  }
 0x1e6   :  { %939 = vmatprep.subr.mxu1 %v1054_v1 }
 0x1e7   :  { %940 = vmatpush3.msk.msra.mxu1 %vm1113_vm8, %v1056_v12  ;;  %vm1547_vm8 = vnez %v1530_v35 }
 0x1e8   :  { %941 = vmatprep.subr.mxu1 %v1054_v1 }
 0x1e9   :  { %942 = vmatpush3.msk.msra.mxu1 %vm1121_vm11, %v1056_v12  ;;  %vm1548_vm11 = vnez %v1532_v36 }
 0x1ea   :  { %943 = vmatprep.subr.mxu1 %v1054_v1 }
 0x1eb   :  { %944 = vmatpush3.msk.msra.mxu1 %vm1132_vm14, %v1056_v12  ;;  %vm1549_vm14 = vmmov %vm1544_vm9 }
 0x1ec   :  { %945 = vmatprep.subr.mxu1 %v1054_v1 }
 0x1ed   :  { %946 = vmatpush3.msk.msra.mxu1 %vm1143_vm2, %v1056_v12 }
 0x1ee   :  { %947 = vmatprep.subr.mxu1 %v1054_v1 }
 0x1ef   :  { %948 = vmatpush3.msk.msra.mxu1 %vm1154_vm5, %v1056_v12  ;;  %vm637_vm5 = vcmask 95232  }
 0x1f0   :  { %949 = vmatprep.subr.mxu1 %v1054_v1 }
 0x1f1   :  { %950 = vmatpush3.msk.msra.mxu1 %vm1165_vm10, %v1056_v12  ;;  %vm641_vm10 = vcmask 1045504  }
 0x1f2   :  { %951 = vmatprep.subr.mxu1 %v1054_v1 }
 0x1f3   :  { %952 = vmatpush3.msk.msra.mxu1 %vm1534_vm0, %v1056_v12 }
 0x1f4   :  { %953 = vmatprep.subr.mxu1 %v1054_v1 }
 0x1f5   :  { %954 = vmatpush3.msk.msra.mxu1 %vm1535_vm4, %v1056_v12 }
 0x1f6   :  { %955 = vmatprep.subr.mxu1 %v1054_v1 }
 0x1f7   :  { %956 = vmatpush3.msk.msra.mxu1 %vm1536_vm1, %v1056_v12 }
 0x1f8   :  { %957 = vmatprep.subr.mxu1 %v1054_v1 }
 0x1f9   :  { %958 = vmatpush3.msk.msra.mxu1 %vm1537_vm3, %v1056_v12 }
 0x1fa   :  { %959 = vmatprep.subr.mxu1 %v1054_v1 }
 0x1fb   :  { %960 = vmatpush3.msk.msra.mxu1 %vm1543_vm12, %v1056_v12 }
 0x1fc   :  { %961 = vmatprep.subr.mxu1 %v1054_v1 }
 0x1fd   :  { %962 = vmatpush3.msk.msra.mxu1 %vm1546_vm7, %v1056_v12 }
 0x1fe   :  { %963 = vmatprep.subr.mxu1 %v1054_v1 }
 0x1ff   :  { %964 = vmatpush3.msk.msra.mxu1 %vm1547_vm8, %v1056_v12 }
 0x200   :  { %965 = vmatprep.subr.mxu1 %v1054_v1 }
 0x201   :  { %966 = vmatpush3.msk.msra.mxu1 %vm1548_vm11, %v1056_v12  ;;  %v633_v12 = vmul.u32 12, %v1082_v2 }
 0x202   :  { %968 = vmatmul.mubr.msk.f32.vlgmr.msra.gmra.mxu1 %vm1549_vm14, %v548_v9 }
 0x203   :  { %v634_v26 = vadd.s32 %v633_v12, %v1084_v3 }
 0x205   :  { %vm635_vm2 = vcmp.lt.s32.totalorder %v634_v26, 64 }
 0x295   :  { %v534_v10 = vpop.f32.mrf.mxu0 }
 0x297   :  { %v936_v11 = vpop.f32.mrf.mxu0 }
 0x2a4   :  { %v375_v13 = vpop.f32.mrf.mxu1 }
 0x2a5   :  { %980 = vlog2.f32 %v375_v13 }
 0x2a6   :  { %v896_v14 = vpop.f32.mrf.mxu1 }
 0x2b2   :  { %v981_v15 = vpop.eup %980 }
 0x2b3   :  { %v380_v16 = vmul.f32 0.6931472, %v981_v15 }
 0x2b5   :  { %v538_v17 = vsub.f32 %v534_v10, %v380_v16  ;;  %v622_v18 = vmul.f32 -0.1, %v380_v16 }
 0x2b7   :  { %v539_v19 = vmul.f32 0.7, %v538_v17  ;;  %v623_v20 = vmul.f32 1.442695, %v622_v18 }
 0x2b9   :  { %v540_v21 = vmul.f32 1.442695, %v539_v19  ;;  %982 = vpow2.f32 %v623_v20 }
 0x2bb   :  { %984 = vpow2.f32 %v540_v21 }
 0x2c2   :  { %v618_v1 = vpop.f32.mrf.mxu1 }
 0x2c4   :  { %v969_v22 = vpop.f32.mrf.mxu1 }
 0x2c6   :  { %v983_v23 = vpop.eup %982 }
 0x2c7   :  { %v625_v24 = vmul.f32 %v983_v23, %v618_v1 }
 0x2c8   :  { %v985_v25 = vpop.eup %984 }
 0x2c9   :  { %v626_v27 = vsub.f32 1.0, %v985_v25  ;;  %v628_v28 = vmul.f32 1.2, %v625_v24 }
 0x2cb   :  { %v627_v29 = vmul.f32 1.4285715, %v626_v27 }
 0x2cd   :  { %v629_v30 = vadd.f32 %v628_v28, %v627_v29 }
 0x2cf   :  { %v636_v31 = vsel %vm635_vm2, %v629_v30, 0.0 }
 0x2d0   :  { %v638_v32 = vsel %vm637_vm5, %v636_v31, 0.0 }
 0x2d1   :  { %639 = vadd.xlane.f32.xlu0 %v638_v32 }
 0x35a   :  { %v640_v33 = vpop.xlane.xlu0 %639 }
 0x35b   :  { %v642_v34 = vsel %vm641_vm10, %v640_v33, 0.0 }
 0x35c   :  { %v643_v35 = vrot.slane %v642_v34, 4 }
 0x35e   :  { %v644_v36 = vadd.f32 %v643_v35, %v642_v34 }
 0x360   :  { %v645_v2 = vrot.slane %v644_v36, 2 }
 0x362   :  { %v646_v37 = vadd.f32 %v645_v2, %v644_v36 }
 0x364   :  { %v647_v38 = vrot.slane %v646_v37, 1 }
 0x366   :  { %v648_v3 = vadd.f32 %v647_v38, %v646_v37 }
 0x368   :  { %650 = vst.msk [vmem:[#allocation7] sm:$0x1] %vm649_vm6, %v648_v3 }
 0x369   :  { %1037 = shalt.err (!%p1034_p0)
}
 0x36a   :  { %660 = dma.vmem_to_hbm [thread:$0]  %s658_s1, 16, %s1479_s2, [#allocation4]  }
 0x36b   :  { %1050 = dma.done.wait [#allocation4], 16  }
 0x36c   :  { %1051 = vsyncadd [#allocation4], 4294967280 }
 0x36d   :  { %664 = vsyncpa [#allocation3], 1 }
 0x36e   :  { %665 = vsyncpa [#allocation6], 1 }
 0x36f   :  { %666 = vsyncpa [#allocation4], 1 }

</bundles_post_ra>
